<compile_context>
chip_gen: v5e
topology: v5e:2x2
jax: 0.10.0
libtpu: 0.0.40
codegen_flags: <defaults>
</compile_context>

<pallas_src>
import functools

import numpy as np

import jax
import jax.numpy as jnp
from jax import lax
from jax.experimental import pallas as pl
from jax.experimental.pallas import tpu as pltpu


# ---------------------------------------------------------------------------
# Pallas kernel
# ---------------------------------------------------------------------------
def _resblock_kernel(x_ref, ops1_ref, ops2_ref, b1_ref, b2_ref, out_ref, *,
                     final):
    """Nb images per grid step, everything lane-dense.

    x_ref    : (Nb, Hr, PL) packed f32 input  (PL = P*W*C lanes, Hr = H/P rows)
    ops*_ref : (PL, 3*PL)   stacked band operators [B_above | B_same | B_below] (bf16)
    b*_ref   : (1, PL)      packed f32 biases
    out_ref  : (Nb, Hr, PL) packed f32 output
    """
    nb, hr, nl = x_ref.shape
    m = nb * hr
    f32 = jnp.float32

    x = x_ref[...].reshape(m, nl)

    # Per-image row-boundary masks: rows that must NOT receive shifted-in data
    # (first / last packed row of each image; also kills the roll wrap-around).
    row = lax.broadcasted_iota(jnp.int32, (m, 1), 0)
    top_row = (row % hr) == 0
    bot_row = (row % hr) == (hr - 1)

    def band_conv(v, ops_ref, b_ref):
        # One wide MXU push: (m, PL) @ (PL, 3*PL), f32 accumulation.
        z = jnp.dot(v.astype(ops_ref.dtype), ops_ref[...],
                    preferred_element_type=f32)
        z_above = z[:, :nl]           # x[r] @ B_above -> needed at output row r+1
        z_same = z[:, nl:2 * nl]      # x[r] @ B_same  -> output row r
        z_below = z[:, 2 * nl:]       # x[r] @ B_below -> needed at output row r-1
        from_above = jnp.where(top_row, 0.0, pltpu.roll(z_above, 1, axis=0))
        from_below = jnp.where(bot_row, 0.0, pltpu.roll(z_below, m - 1, axis=0))
        return b_ref[...] + z_same + from_above + from_below

    h1 = jnp.maximum(band_conv(x, ops1_ref, b1_ref), 0.0)     # conv1 + ReLU
    y = band_conv(h1, ops2_ref, b2_ref) + x                   # conv2 + residual
    if not final:
        y = jnp.maximum(y, 0.0)
    out_ref[...] = y.reshape(nb, hr, nl)


# ---------------------------------------------------------------------------
# Host-side (plain JAX / numpy) weight & layout preparation
# ---------------------------------------------------------------------------
def _weight_norm_hwio(v_oihw, g_o):
    """PyTorch weight_norm (dim=0): w = g * v / ||v||, returned as HWIO."""
    norm = jnp.sqrt(jnp.sum(v_oihw * v_oihw, axis=(1, 2, 3), keepdims=True))
    w_oihw = v_oihw * (g_o.reshape(-1, 1, 1, 1) / norm)
    return jnp.transpose(w_oihw, (2, 3, 1, 0))  # (kh, kw, Cin, Cout)


def _build_band_operator(w_hwio, P, W):
    """Fold a 3x3 'same' conv into one stacked (PL, 3*PL) band operator.

    Packed layout: lane = p*(W*C) + w*C + c, image row h = r*P + p.
      z = x_packed @ ops;  z[:, 0:PL]    = contribution needed at row r+1 (from row r)
                           z[:, PL:2PL]  = contribution at row r
                           z[:, 2PL:3PL] = contribution needed at row r-1 (from row r)
    W-direction "same" padding is baked in (invalid taps dropped); H-direction
    padding is handled in-kernel by masking the shifted contributions.
    """
    C = w_hwio.shape[2]
    L = W * C
    PL = P * L
    dy, dx, ci, co, p, wo = [a.ravel() for a in np.meshgrid(
        np.arange(3), np.arange(3), np.arange(C), np.arange(C),
        np.arange(P), np.arange(W), indexing="ij")]
    wi = wo + dx - 1            # input width index
    h_rel = p + dy - 1          # input image row relative to packed-row base
    valid = (wi >= 0) & (wi < W)
    dy, dx, ci, co, p, wo, wi, h_rel = (
        a[valid] for a in (dy, dx, ci, co, p, wo, wi, h_rel))
    band = np.where(h_rel < 0, 0, np.where(h_rel >= P, 2, 1))
    slot = np.mod(h_rel, P)
    rows = slot * L + wi * C + ci            # input lane within its packed row
    cols = band * PL + p * L + wo * C + co   # band-offset output lane
    vals = w_hwio[dy, dx, ci, co]
    ops = jnp.zeros((PL, 3 * PL), jnp.float32)
    return ops.at[rows, cols].add(vals)


def _row_pack_factor(H, W, C):
    """Rows packed per lane-row so the lane dim is 128 when shapes allow it."""
    L = W * C
    P = 128 // L if (L <= 128 and 128 % L == 0) else 1
    while P > 1 and H % P:
        P //= 2
    return P   # if P*W*C != 128 the kernel is still correct, just not lane-dense


def _choose_batch_tile(N, Hr):
    """Images per grid step: target ~256 sublanes, keep >=2 steps when N >= 2."""
    target = max(1, 256 // Hr)
    best = 1
    for d in range(1, N + 1):
        if N % d:
            continue
        steps = N // d
        if d <= target and (steps >= 2 or N == 1):
            best = max(best, d)
    return best


def prepare_resblock_operands(params, H, W, C):
    """One-time prep (weight-norm + band-operator folding + bias packing)."""
    v1, g1, b1, v2, g2, b2 = params
    P = _row_pack_factor(H, W, C)
    PL = P * W * C
    w1 = _weight_norm_hwio(v1.astype(jnp.float32), g1.astype(jnp.float32))
    w2 = _weight_norm_hwio(v2.astype(jnp.float32), g2.astype(jnp.float32))
    ops1 = _build_band_operator(w1, P, W).astype(jnp.bfloat16)
    ops2 = _build_band_operator(w2, P, W).astype(jnp.bfloat16)
    b1p = jnp.tile(b1.astype(jnp.float32), P * W).reshape(1, PL)
    b2p = jnp.tile(b2.astype(jnp.float32), P * W).reshape(1, PL)
    return P, (ops1, ops2, b1p, b2p)


# ---------------------------------------------------------------------------
# Pallas wrappers
# ---------------------------------------------------------------------------
def resblock_apply_packed(x_packed, operands, final=False):
    """Apply the ResBlock in the packed (N, Hr, PL) layout (chainable)."""
    N, Hr, PL = x_packed.shape
    ops1, ops2, b1p, b2p = operands
    Nb = _choose_batch_tile(N, Hr)
    kernel = functools.partial(_resblock_kernel, final=final)
    return pl.pallas_call(
        kernel,
        out_shape=jax.ShapeDtypeStruct((N, Hr, PL), jnp.float32),
        grid=(N // Nb,),
        in_specs=[
            pl.BlockSpec((Nb, Hr, PL), lambda n: (n, 0, 0)),
            pl.BlockSpec(ops1.shape, lambda n: (0, 0)),
            pl.BlockSpec(ops2.shape, lambda n: (0, 0)),
            pl.BlockSpec((1, PL), lambda n: (0, 0)),
            pl.BlockSpec((1, PL), lambda n: (0, 0)),
        ],
        out_specs=pl.BlockSpec((Nb, Hr, PL), lambda n: (n, 0, 0)),
        compiler_params=pltpu.CompilerParams(
            dimension_semantics=("parallel",)),
    )(x_packed, ops1, ops2, b1p, b2p)


@functools.partial(jax.jit, static_argnames=("final",))
def resblock_forward(x_nchw, params, final=False):
    """NCHW entry point matching the PyTorch module.

    For chained ResBlocks, pack once, call resblock_apply_packed repeatedly,
    and unpack once — the NCHW<->packed relayout below is the only part of
    this wrapper that is per-call HBM overhead.
    """
    N, C, H, W = x_nchw.shape
    P, operands = prepare_resblock_operands(params, H, W, C)
    Hr, PL = H // P, P * W * C

    x_packed = jnp.transpose(x_nchw, (0, 2, 3, 1)).astype(jnp.float32)
    x_packed = x_packed.reshape(N, Hr, PL)

    out_packed = resblock_apply_packed(x_packed, operands, final=final)

    out = out_packed.reshape(N, H, W, C)
    return jnp.transpose(out, (0, 3, 1, 2))  # NHWC -> NCHW


# ---------------------------------------------------------------------------
# Pure-JAX reference (lax conv) for correctness checking
# ---------------------------------------------------------------------------
def _reference_forward(x_nchw, params, final=False):
    v1, g1, b1, v2, g2, b2 = params

    def wn(v, g):
        norm = jnp.sqrt(jnp.sum(v * v, axis=(1, 2, 3), keepdims=True))
        return v * (g.reshape(-1, 1, 1, 1) / norm)

    def conv(x, w, b):
        y = lax.conv_general_dilated(
            x, w, window_strides=(1, 1), padding="SAME",
            dimension_numbers=("NCHW", "OIHW", "NCHW"),
            precision=lax.Precision.HIGHEST)
        return y + b.reshape(1, -1, 1, 1)

    identity = x_nchw
    x = jnp.maximum(conv(x_nchw, wn(v1, g1), b1), 0.0)
    x = conv(x, wn(v2, g2), b2) + identity
    return x if final else jnp.maximum(x, 0.0)


if __name__ == "__main__":
    C, H, W = 4, 16, 16  # Conv2d(n_ch, n_ch, 3, 1, 1) with n_ch=4

    key = jax.random.PRNGKey(0)
    kx, kv1, kg1, kb1, kv2, kg2, kb2, kx2 = jax.random.split(key, 8)

    v1 = jax.random.normal(kv1, (C, C, 3, 3), dtype=jnp.float32) * 0.1
    g1 = jax.random.uniform(kg1, (C,), dtype=jnp.float32, minval=0.5, maxval=1.5)
    b1 = jax.random.normal(kb1, (C,), dtype=jnp.float32) * 0.1
    v2 = jax.random.normal(kv2, (C, C, 3, 3), dtype=jnp.float32) * 0.1
    g2 = jax.random.uniform(kg2, (C,), dtype=jnp.float32, minval=0.5, maxval=1.5)
    b2 = jax.random.normal(kb2, (C,), dtype=jnp.float32) * 0.1
    params = (v1, g1, b1, v2, g2, b2)

    # bf16 matmul operands (f32 accumulate) vs f32 lax.conv reference -> 2e-2 tol.
    TOL = dict(atol=2e-2, rtol=2e-2)

    # Small batch (module-typical shape).
    x = jax.random.normal(kx, (2, C, H, W), dtype=jnp.float32)
    out = jax.block_until_ready(resblock_forward(x, params, final=False))
    out_final = jax.block_until_ready(resblock_forward(x, params, final=True))
    ref = _reference_forward(x, params, final=False)
    ref_final = _reference_forward(x, params, final=True)
    assert out.shape == x.shape and out.dtype == jnp.float32
    assert jnp.allclose(out, ref, **TOL)
    assert jnp.allclose(out_final, ref_final, **TOL)

    # Larger batch exercises the multi-image-per-block path (Nb > 1) and the
    # cross-image boundary masking of the rolled contributions.
    x8 = jax.random.normal(kx2, (8, C, H, W), dtype=jnp.float32)
    out8 = jax.block_until_ready(resblock_forward(x8, params, final=False))
    ref8 = _reference_forward(x8, params, final=False)
    assert jnp.allclose(out8, ref8, **TOL)

    print("KERNEL_OK")
</pallas_src>

<mosaic_0001>
module attributes {stable_mosaic.version = 11 : i64} {
  func.func @_resblock_kernel(%arg0: i32, %arg1: memref<1x8x128xf32, #tpu.memory_space<vmem>>, %arg2: memref<128x384xbf16, #tpu.memory_space<vmem>>, %arg3: memref<128x384xbf16, #tpu.memory_space<vmem>>, %arg4: memref<1x128xf32, #tpu.memory_space<vmem>>, %arg5: memref<1x128xf32, #tpu.memory_space<vmem>>, %arg6: memref<1x8x128xf32, #tpu.memory_space<vmem>>) attributes {dimension_semantics = [#tpu.dimension_semantics<parallel>], iteration_bounds = array<i64: 2>, scalar_prefetch = 0 : i64, scratch_operands = 0 : i64, tpu.core_type = #tpu.core_type<tc>, window_params = [{transform_indices = @transform_0, window_bounds = array<i64: 1, 8, 128>}, {pipeline_mode = #tpu.pipeline_mode<synchronous>, transform_indices = @transform_1, window_bounds = array<i64: 128, 384>}, {pipeline_mode = #tpu.pipeline_mode<synchronous>, transform_indices = @transform_2, window_bounds = array<i64: 128, 384>}, {pipeline_mode = #tpu.pipeline_mode<synchronous>, transform_indices = @transform_3, window_bounds = array<i64: 1, 128>}, {pipeline_mode = #tpu.pipeline_mode<synchronous>, transform_indices = @transform_4, window_bounds = array<i64: 1, 128>}, {transform_indices = @transform_5, window_bounds = array<i64: 1, 8, 128>}]} {
    %c0 = arith.constant 0 : index
    %c0_0 = arith.constant 0 : index
    %c0_1 = arith.constant 0 : index
    %0 = vector.load %arg1[%c0, %c0_0, %c0_1] : memref<1x8x128xf32, #tpu.memory_space<vmem>>, vector<1x8x128xf32>
    %1 = vector.shape_cast %0 : vector<1x8x128xf32> to vector<8x128xf32>
    %2 = tpu.iota {dimensions = array<i32: 0>} : vector<8x1xi32>
    %c8_i32 = arith.constant 8 : i32
    %c0_i32 = arith.constant 0 : i32
    %3 = arith.cmpi eq, %c8_i32, %c0_i32 : i32
    %c1_i32 = arith.constant 1 : i32
    %4 = arith.select %3, %c1_i32, %c8_i32 : i32
    %5 = vector.broadcast %4 : i32 to vector<8x1xi32>
    %6 = arith.remsi %2, %5 : vector<8x1xi32>
    %c0_i32_2 = arith.constant 0 : i32
    %7 = vector.broadcast %c0_i32_2 : i32 to vector<8x1xi32>
    %8 = arith.cmpi ne, %6, %7 : vector<8x1xi32>
    %c0_i32_3 = arith.constant 0 : i32
    %9 = vector.broadcast %c0_i32_3 : i32 to vector<8x1xi32>
    %10 = arith.cmpi slt, %6, %9 : vector<8x1xi32>
    %c0_i32_4 = arith.constant 0 : i32
    %11 = arith.cmpi slt, %4, %c0_i32_4 : i32
    %12 = vector.broadcast %11 : i1 to vector<8x1xi1>
    %13 = vector.broadcast %12 : vector<8x1xi1> to vector<8x1xi1>
    %14 = arith.xori %10, %13 : vector<8x1xi1>
    %15 = arith.andi %14, %8 : vector<8x1xi1>
    %16 = vector.broadcast %4 : i32 to vector<8x1xi32>
    %17 = arith.addi %6, %16 : vector<8x1xi32>
    %18 = arith.select %15, %17, %6 : vector<8x1xi1>, vector<8x1xi32>
    %c0_i32_5 = arith.constant 0 : i32
    %19 = vector.broadcast %c0_i32_5 : i32 to vector<8x1xi32>
    %20 = arith.cmpi eq, %18, %19 : vector<8x1xi32>
    %c8_i32_6 = arith.constant 8 : i32
    %c0_i32_7 = arith.constant 0 : i32
    %21 = arith.cmpi eq, %c8_i32_6, %c0_i32_7 : i32
    %c1_i32_8 = arith.constant 1 : i32
    %22 = arith.select %21, %c1_i32_8, %c8_i32_6 : i32
    %23 = vector.broadcast %22 : i32 to vector<8x1xi32>
    %24 = arith.remsi %2, %23 : vector<8x1xi32>
    %c0_i32_9 = arith.constant 0 : i32
    %25 = vector.broadcast %c0_i32_9 : i32 to vector<8x1xi32>
    %26 = arith.cmpi ne, %24, %25 : vector<8x1xi32>
    %c0_i32_10 = arith.constant 0 : i32
    %27 = vector.broadcast %c0_i32_10 : i32 to vector<8x1xi32>
    %28 = arith.cmpi slt, %24, %27 : vector<8x1xi32>
    %c0_i32_11 = arith.constant 0 : i32
    %29 = arith.cmpi slt, %22, %c0_i32_11 : i32
    %30 = vector.broadcast %29 : i1 to vector<8x1xi1>
    %31 = vector.broadcast %30 : vector<8x1xi1> to vector<8x1xi1>
    %32 = arith.xori %28, %31 : vector<8x1xi1>
    %33 = arith.andi %32, %26 : vector<8x1xi1>
    %34 = vector.broadcast %22 : i32 to vector<8x1xi32>
    %35 = arith.addi %24, %34 : vector<8x1xi32>
    %36 = arith.select %33, %35, %24 : vector<8x1xi1>, vector<8x1xi32>
    %c7_i32 = arith.constant 7 : i32
    %37 = vector.broadcast %c7_i32 : i32 to vector<8x1xi32>
    %38 = arith.cmpi eq, %36, %37 : vector<8x1xi32>
    %39 = arith.truncf %1 : vector<8x128xf32> to vector<8x128xbf16>
    %c0_12 = arith.constant 0 : index
    %c0_13 = arith.constant 0 : index
    %40 = vector.load %arg2[%c0_12, %c0_13] : memref<128x384xbf16, #tpu.memory_space<vmem>>, vector<128x384xbf16>
    %cst = arith.constant dense<0.000000e+00> : vector<8x384xf32>
    %41 = tpu.matmul %39, %40, %cst {dimension_numbers = #tpu.dot_dimension_numbers<[1], [0], [0], [1], [0, 0, 1, 1], [], []>} : vector<8x128xbf16>, vector<128x384xbf16>, vector<8x384xf32> -> vector<8x384xf32>
    %42 = vector.extract_strided_slice %41 {offsets = [0, 0], sizes = [8, 128], strides = [1, 1]} : vector<8x384xf32> to vector<8x128xf32>
    %43 = vector.extract_strided_slice %41 {offsets = [0, 128], sizes = [8, 128], strides = [1, 1]} : vector<8x384xf32> to vector<8x128xf32>
    %44 = vector.extract_strided_slice %41 {offsets = [0, 256], sizes = [8, 128], strides = [1, 1]} : vector<8x384xf32> to vector<8x128xf32>
    %c1_i32_14 = arith.constant 1 : i32
    %45 = tpu.dynamic_rotate %42 by %c1_i32_14 dim 0 : vector<8x128xf32>, i32 -> vector<8x128xf32>
    %cst_15 = arith.constant 0.000000e+00 : f32
    %46 = vector.shape_cast %20 : vector<8x1xi1> to vector<8x1xi1>
    %47 = vector.broadcast %46 : vector<8x1xi1> to vector<8x128xi1>
    %48 = vector.broadcast %cst_15 : f32 to vector<8x128xf32>
    %49 = arith.select %47, %48, %45 : vector<8x128xi1>, vector<8x128xf32>
    %c7_i32_16 = arith.constant 7 : i32
    %50 = tpu.dynamic_rotate %44 by %c7_i32_16 dim 0 : vector<8x128xf32>, i32 -> vector<8x128xf32>
    %cst_17 = arith.constant 0.000000e+00 : f32
    %51 = vector.shape_cast %38 : vector<8x1xi1> to vector<8x1xi1>
    %52 = vector.broadcast %51 : vector<8x1xi1> to vector<8x128xi1>
    %53 = vector.broadcast %cst_17 : f32 to vector<8x128xf32>
    %54 = arith.select %52, %53, %50 : vector<8x128xi1>, vector<8x128xf32>
    %c0_18 = arith.constant 0 : index
    %c0_19 = arith.constant 0 : index
    %55 = vector.load %arg4[%c0_18, %c0_19] : memref<1x128xf32, #tpu.memory_space<vmem>>, vector<1x128xf32>
    %56 = vector.broadcast %55 : vector<1x128xf32> to vector<8x128xf32>
    %57 = arith.addf %56, %43 : vector<8x128xf32>
    %58 = arith.addf %57, %49 : vector<8x128xf32>
    %59 = arith.addf %58, %54 : vector<8x128xf32>
    %cst_20 = arith.constant 0.000000e+00 : f32
    %60 = vector.broadcast %cst_20 : f32 to vector<8x128xf32>
    %61 = arith.maximumf %59, %60 : vector<8x128xf32>
    %62 = arith.truncf %61 : vector<8x128xf32> to vector<8x128xbf16>
    %c0_21 = arith.constant 0 : index
    %c0_22 = arith.constant 0 : index
    %63 = vector.load %arg3[%c0_21, %c0_22] : memref<128x384xbf16, #tpu.memory_space<vmem>>, vector<128x384xbf16>
    %cst_23 = arith.constant dense<0.000000e+00> : vector<8x384xf32>
    %64 = tpu.matmul %62, %63, %cst_23 {dimension_numbers = #tpu.dot_dimension_numbers<[1], [0], [0], [1], [0, 0, 1, 1], [], []>} : vector<8x128xbf16>, vector<128x384xbf16>, vector<8x384xf32> -> vector<8x384xf32>
    %65 = vector.extract_strided_slice %64 {offsets = [0, 0], sizes = [8, 128], strides = [1, 1]} : vector<8x384xf32> to vector<8x128xf32>
    %66 = vector.extract_strided_slice %64 {offsets = [0, 128], sizes = [8, 128], strides = [1, 1]} : vector<8x384xf32> to vector<8x128xf32>
    %67 = vector.extract_strided_slice %64 {offsets = [0, 256], sizes = [8, 128], strides = [1, 1]} : vector<8x384xf32> to vector<8x128xf32>
    %c1_i32_24 = arith.constant 1 : i32
    %68 = tpu.dynamic_rotate %65 by %c1_i32_24 dim 0 : vector<8x128xf32>, i32 -> vector<8x128xf32>
    %cst_25 = arith.constant 0.000000e+00 : f32
    %69 = vector.shape_cast %20 : vector<8x1xi1> to vector<8x1xi1>
    %70 = vector.broadcast %69 : vector<8x1xi1> to vector<8x128xi1>
    %71 = vector.broadcast %cst_25 : f32 to vector<8x128xf32>
    %72 = arith.select %70, %71, %68 : vector<8x128xi1>, vector<8x128xf32>
    %c7_i32_26 = arith.constant 7 : i32
    %73 = tpu.dynamic_rotate %67 by %c7_i32_26 dim 0 : vector<8x128xf32>, i32 -> vector<8x128xf32>
    %cst_27 = arith.constant 0.000000e+00 : f32
    %74 = vector.shape_cast %38 : vector<8x1xi1> to vector<8x1xi1>
    %75 = vector.broadcast %74 : vector<8x1xi1> to vector<8x128xi1>
    %76 = vector.broadcast %cst_27 : f32 to vector<8x128xf32>
    %77 = arith.select %75, %76, %73 : vector<8x128xi1>, vector<8x128xf32>
    %c0_28 = arith.constant 0 : index
    %c0_29 = arith.constant 0 : index
    %78 = vector.load %arg5[%c0_28, %c0_29] : memref<1x128xf32, #tpu.memory_space<vmem>>, vector<1x128xf32>
    %79 = vector.broadcast %78 : vector<1x128xf32> to vector<8x128xf32>
    %80 = arith.addf %79, %66 : vector<8x128xf32>
    %81 = arith.addf %80, %72 : vector<8x128xf32>
    %82 = arith.addf %81, %77 : vector<8x128xf32>
    %83 = arith.addf %82, %1 : vector<8x128xf32>
    %cst_30 = arith.constant 0.000000e+00 : f32
    %84 = vector.broadcast %cst_30 : f32 to vector<8x128xf32>
    %85 = arith.maximumf %83, %84 : vector<8x128xf32>
    %86 = vector.shape_cast %85 : vector<8x128xf32> to vector<1x8x128xf32>
    %c0_31 = arith.constant 0 : index
    %c0_32 = arith.constant 0 : index
    %c0_33 = arith.constant 0 : index
    %87 = vector.load %arg6[%c0_31, %c0_32, %c0_33] : memref<1x8x128xf32, #tpu.memory_space<vmem>>, vector<1x8x128xf32>
    tpu.vector_store %arg6[%c0_31, %c0_32, %c0_33], %86 {strides = array<i32>} : memref<1x8x128xf32, #tpu.memory_space<vmem>>, vector<1x8x128xf32>,
    return
  }
  func.func @transform_0(%arg0: i32) -> (i32, i32, i32) {
    %c0_i32 = arith.constant 0 : i32
    %c0_i32_0 = arith.constant 0 : i32
    %c0_i32_1 = arith.constant 0 : i32
    return %arg0, %c0_i32, %c0_i32_0 : i32, i32, i32
  }
  func.func @transform_1(%arg0: i32) -> (i32, i32) {
    %c0_i32 = arith.constant 0 : i32
    %c0_i32_0 = arith.constant 0 : i32
    %c0_i32_1 = arith.constant 0 : i32
    return %c0_i32, %c0_i32_0 : i32, i32
  }
  func.func @transform_2(%arg0: i32) -> (i32, i32) {
    %c0_i32 = arith.constant 0 : i32
    %c0_i32_0 = arith.constant 0 : i32
    %c0_i32_1 = arith.constant 0 : i32
    return %c0_i32, %c0_i32_0 : i32, i32
  }
  func.func @transform_3(%arg0: i32) -> (i32, i32) {
    %c0_i32 = arith.constant 0 : i32
    %c0_i32_0 = arith.constant 0 : i32
    %c0_i32_1 = arith.constant 0 : i32
    return %c0_i32, %c0_i32_0 : i32, i32
  }
  func.func @transform_4(%arg0: i32) -> (i32, i32) {
    %c0_i32 = arith.constant 0 : i32
    %c0_i32_0 = arith.constant 0 : i32
    %c0_i32_1 = arith.constant 0 : i32
    return %c0_i32, %c0_i32_0 : i32, i32
  }
  func.func @transform_5(%arg0: i32) -> (i32, i32, i32) {
    %c0_i32 = arith.constant 0 : i32
    %c0_i32_0 = arith.constant 0 : i32
    %c0_i32_1 = arith.constant 0 : i32
    return %arg0, %c0_i32, %c0_i32_0 : i32, i32, i32
  }
}

</mosaic_0001>

<bundles_post_ra>
// kernel: tile.13
= control target key start
LH: loop header
LB: loop body
LE: loop exit
PB: predicated region body
PF: predicated region fallthrough
CT: control target
= control target key end

     0   :  { %s40_s0 = inlined_call_operand.vmem [shape: f32[4], index: 0, kind: input, shape index: {}]   ;;  %s41_s1 = inlined_call_operand.vmem [shape: f32[32,4], index: 1, kind: output, shape index: {}]  }
   0x1   :  { %v4_v0 = vld [vmem:[%s40_s0] ss:$0 sm:$0xff] }
   0x2   :  { %5 = vst [vmem:[%s41_s1] sm:$0xff] %v4_v0 }
   0x3   :  { %12 = vst [vmem:[%s41_s1 + $0x8] sm:$0xff] %v4_v0 }
   0x4   :  { %13 = vst [vmem:[%s41_s1 + $0x10] sm:$0xff] %v4_v0 }
   0x5   :  { %14 = vst [vmem:[%s41_s1 + $0x18] sm:$0xff] %v4_v0 }

// kernel: tile.14
= control target key start
LH: loop header
LB: loop body
LE: loop exit
PB: predicated region body
PF: predicated region fallthrough
CT: control target
= control target key end

     0   :  { %s259_s10 = smov 124   ;;  %s260_s11 = smov 116   ;;  %vm3_vm0 = vcmask 31744   ;;  %vm9_vm1 = vcmask 1048544   ;;  %vm15_vm2 = vcmask 1015744   ;;  %vm21_vm3 = vcmask 982944   ;;  %s399_s0 = inlined_call_operand.vmem [shape: f32[32,4], index: 0, kind: input, shape index: {}]   ;;  %s400_s1 = inlined_call_operand.vmem [shape: f32[1,128], index: 1, kind: output, shape index: {}]  }
   0x1   :  { %v197_v0 = vld [vmem:[%s399_s0 + $0x1f] sm:$0x1]   ;;  %v199_v1 = vld [vmem:[%s399_s0 + $0x1d] sm:$0x1]   ;;  %v201_v2 = vld [vmem:[%s399_s0 + $0x1b] sm:$0x1]  }
   0x2   :  { %7 = vrot.lane.b32.xlu0 %v197_v0, %s259_s10  ;;  %19 = vrot.lane.b32.xlu1 %v199_v1, %s260_s11  ;;  %s261_s14 = smov 108   ;;  %v198_v3 = vld [vmem:[%s399_s0 + $0x1e] sm:$0x1]   ;;  %v200_v4 = vld [vmem:[%s399_s0 + $0x1c] sm:$0x1]   ;;  %s262_s19 = smov 120  }
   0x3   :  { %31 = vrot.lane.b32.xlu2 %v201_v2, %s261_s14  ;;  %s263_s20 = smov 112   ;;  %v202_v5 = vld [vmem:[%s399_s0 + $0x1a] sm:$0x1]   ;;  %s264_s23 = smov 104   ;;  %v203_v6 = vld [vmem:[%s399_s0 + $0x19] sm:$0x1]  }
   0x4   :  { %v204_v7 = vld [vmem:[%s399_s0 + $0x18] sm:$0x1]   ;;  %s265_s28 = smov 100   ;;  %s266_s29 = smov 96   ;;  %v205_v8 = vld [vmem:[%s399_s0 + $0x17] sm:$0x1]  }
   0x5   :  { %s267_s3 = smov 92   ;;  %v206_v9 = vld [vmem:[%s399_s0 + $0x16] sm:$0x1]   ;;  %v207_v10 = vld [vmem:[%s399_s0 + $0x15] sm:$0x1]   ;;  %s268_s8 = smov 88  }
   0x6   :  { %s269_s9 = smov 84   ;;  %v208_v11 = vld [vmem:[%s399_s0 + $0x14] sm:$0x1]   ;;  %s270_s12 = smov 80   ;;  %v209_v12 = vld [vmem:[%s399_s0 + $0x13] sm:$0x1]  }
   0x7   :  { %v210_v13 = vld [vmem:[%s399_s0 + $0x12] sm:$0x1]   ;;  %s271_s17 = smov 76   ;;  %s272_s18 = smov 72   ;;  %v211_v14 = vld [vmem:[%s399_s0 + $0x11] sm:$0x1]  }
   0x8   :  { %s273_s21 = smov 68   ;;  %v212_v15 = vld [vmem:[%s399_s0 + $0x10] sm:$0x1]   ;;  %v213_v16 = vld [vmem:[%s399_s0 + $0xf] sm:$0x1]   ;;  %s274_s26 = smov 64  }
   0x9   :  { %s275_s27 = smov 60   ;;  %v214_v17 = vld [vmem:[%s399_s0 + $0xe] sm:$0x1]   ;;  %s276_s30 = smov 56   ;;  %v215_v18 = vld [vmem:[%s399_s0 + $0xd] sm:$0x1]  }
   0xa   :  { %13 = vrot.lane.b32.xlu0 %v198_v3, %s262_s19  ;;  %25 = vrot.lane.b32.xlu1 %v200_v4, %s263_s20  ;;  %v216_v19 = vld [vmem:[%s399_s0 + $0xc] sm:$0x1]   ;;  %s277_s6 = smov 52   ;;  %s278_s7 = smov 48   ;;  %v217_v20 = vld [vmem:[%s399_s0 + $0xb] sm:$0x1]  }
   0xb   :  { %37 = vrot.lane.b32.xlu2 %v202_v5, %s264_s23  ;;  %s279_s10 = smov 44   ;;  %v218_v21 = vld [vmem:[%s399_s0 + $0xa] sm:$0x1]   ;;  %v219_v22 = vld [vmem:[%s399_s0 + $0x9] sm:$0x1]   ;;  %s280_s15 = smov 40  }
   0xc   :  { %s281_s16 = smov 36   ;;  %v220_v23 = vld [vmem:[%s399_s0 + $0x8] sm:$0x1]   ;;  %s282_s19 = smov 32   ;;  %v221_v24 = vld [vmem:[%s399_s0 + $0x7] sm:$0x1]  }
   0xd   :  { %v222_v25 = vld [vmem:[%s399_s0 + $0x6] sm:$0x1]   ;;  %s283_s24 = smov 28   ;;  %s284_s25 = smov 24   ;;  %v223_v26 = vld [vmem:[%s399_s0 + $0x5] sm:$0x1]  }
   0xe   :  { %v224_v27 = vld [vmem:[%s399_s0 + $0x4] sm:$0x1]   ;;  %v225_v28 = vld [vmem:[%s399_s0 + $0x3] sm:$0x1]   ;;  %s286_s4 = smov 16   ;;  %s287_s5 = smov 12  }
   0xf   :  { %v226_v29 = vld [vmem:[%s399_s0 + $0x2] sm:$0x1]   ;;  %v227_v30 = vld [vmem:[%s399_s0 + $0x1] sm:$0x1]   ;;  %s289_s11 = smov 4   ;;  %vm27_vm4 = vcmask 950144  }
  0x10   :  { %v2_v31 = vld [vmem:[%s399_s0] sm:$0x1]   ;;  %vm33_vm5 = vcmask 917344   ;;  %vm39_vm6 = vcmask 884544   ;;  %vm45_vm7 = vcmask 851744   ;;  %vm51_vm8 = vcmask 818944  }
  0x11   :  { %4 = vst.msk [vmem:[#allocation0] sm:$0x1] %vm3_vm0, %v2_v31   ;;  %vm57_vm9 = vcmask 786144   ;;  %vm63_vm10 = vcmask 753344   ;;  %vm69_vm11 = vcmask 720544   ;;  %vm75_vm12 = vcmask 687744  }
  0x12   :  { %43 = vrot.lane.b32.xlu0 %v203_v6, %s265_s28  ;;  %49 = vrot.lane.b32.xlu1 %v204_v7, %s266_s29  ;;  %s285_s28 = smov 20   ;;  %vm81_vm13 = vcmask 654944   ;;  %vm87_vm14 = vcmask 622144   ;;  %vm93_vm15 = vcmask 589344   ;;  %vm99_vm0 = vcmask 556544  }
  0x13   :  { %55 = vrot.lane.b32.xlu2 %v205_v8, %s267_s3 }
  0x1a   :  { %61 = vrot.lane.b32.xlu0 %v206_v9, %s268_s8  ;;  %67 = vrot.lane.b32.xlu1 %v207_v10, %s269_s9  ;;  %s288_s8 = smov 8  }
  0x1b   :  { %73 = vrot.lane.b32.xlu2 %v208_v11, %s270_s12 }
  0x22   :  { %79 = vrot.lane.b32.xlu0 %v209_v12, %s271_s17  ;;  %85 = vrot.lane.b32.xlu1 %v210_v13, %s272_s18 }
  0x23   :  { %91 = vrot.lane.b32.xlu2 %v211_v14, %s273_s21 }
  0x2a   :  { %97 = vrot.lane.b32.xlu0 %v212_v15, %s274_s26  ;;  %103 = vrot.lane.b32.xlu1 %v213_v16, %s275_s27 }
  0x2b   :  { %109 = vrot.lane.b32.xlu2 %v214_v17, %s276_s30 }
  0x32   :  { %115 = vrot.lane.b32.xlu0 %v215_v18, %s277_s6  ;;  %121 = vrot.lane.b32.xlu1 %v216_v19, %s278_s7 }
  0x33   :  { %127 = vrot.lane.b32.xlu2 %v217_v20, %s279_s10 }
  0x3a   :  { %133 = vrot.lane.b32.xlu0 %v218_v21, %s280_s15  ;;  %139 = vrot.lane.b32.xlu1 %v219_v22, %s281_s16 }
  0x3b   :  { %145 = vrot.lane.b32.xlu2 %v220_v23, %s282_s19 }
  0x42   :  { %151 = vrot.lane.b32.xlu0 %v221_v24, %s283_s24  ;;  %157 = vrot.lane.b32.xlu1 %v222_v25, %s284_s25 }
  0x43   :  { %163 = vrot.lane.b32.xlu2 %v223_v26, %s285_s28 }
  0x4a   :  { %169 = vrot.lane.b32.xlu0 %v224_v27, %s286_s4  ;;  %175 = vrot.lane.b32.xlu1 %v225_v28, %s287_s5 }
  0x4b   :  { %181 = vrot.lane.b32.xlu2 %v226_v29, %s288_s8 }
  0x52   :  { %187 = vrot.lane.b32.xlu0 %v227_v30, %s289_s11 }
  0x5d   :  { %v32_v32 = vpop.permute.xlu2 %31  }
  0x65   :  { %v38_v33 = vpop.permute.xlu2 %37  }
  0x6d   :  { %v56_v34 = vpop.permute.xlu2 %55  }
  0x74   :  { %v8_v35 = vpop.permute.xlu0 %7   ;;  %v20_v36 = vpop.permute.xlu1 %19  }
  0x75   :  { %10 = vst.msk [vmem:[#allocation0] sm:$0x1] %vm9_vm1, %v8_v35   ;;  %v74_v37 = vpop.permute.xlu2 %73   ;;  %vm105_vm1 = vcmask 523744  }
  0x7c   :  { %v14_v38 = vpop.permute.xlu0 %13   ;;  %v26_v39 = vpop.permute.xlu1 %25  }
  0x7d   :  { %16 = vst.msk [vmem:[#allocation0] sm:$0x1] %vm15_vm2, %v14_v38   ;;  %v92_v40 = vpop.permute.xlu2 %91   ;;  %vm111_vm2 = vcmask 490944  }
  0x7e   :  { %22 = vst.msk [vmem:[#allocation0] sm:$0x1] %vm21_vm3, %v20_v36   ;;  %vm117_vm3 = vcmask 458144  }
  0x7f   :  { %28 = vst.msk [vmem:[#allocation0] sm:$0x1] %vm27_vm4, %v26_v39   ;;  %vm123_vm4 = vcmask 425344  }
  0x80   :  { %34 = vst.msk [vmem:[#allocation0] sm:$0x1] %vm33_vm5, %v32_v32   ;;  %vm129_vm5 = vcmask 392544  }
  0x81   :  { %40 = vst.msk [vmem:[#allocation0] sm:$0x1] %vm39_vm6, %v38_v33   ;;  %vm135_vm6 = vcmask 359744  }
  0x84   :  { %v44_v41 = vpop.permute.xlu0 %43   ;;  %v50_v42 = vpop.permute.xlu1 %49  }
  0x85   :  { %46 = vst.msk [vmem:[#allocation0] sm:$0x1] %vm45_vm7, %v44_v41   ;;  %v110_v43 = vpop.permute.xlu2 %109   ;;  %vm141_vm7 = vcmask 326944  }
  0x86   :  { %52 = vst.msk [vmem:[#allocation0] sm:$0x1] %vm51_vm8, %v50_v42   ;;  %vm147_vm8 = vcmask 294144  }
  0x87   :  { %58 = vst.msk [vmem:[#allocation0] sm:$0x1] %vm57_vm9, %v56_v34   ;;  %vm153_vm9 = vcmask 261344  }
  0x8c   :  { %v62_v44 = vpop.permute.xlu0 %61   ;;  %v68_v45 = vpop.permute.xlu1 %67  }
  0x8d   :  { %64 = vst.msk [vmem:[#allocation0] sm:$0x1] %vm63_vm10, %v62_v44   ;;  %v128_v46 = vpop.permute.xlu2 %127   ;;  %vm159_vm10 = vcmask 228544  }
  0x8e   :  { %70 = vst.msk [vmem:[#allocation0] sm:$0x1] %vm69_vm11, %v68_v45   ;;  %vm165_vm11 = vcmask 195744  }
  0x8f   :  { %76 = vst.msk [vmem:[#allocation0] sm:$0x1] %vm75_vm12, %v74_v37   ;;  %vm171_vm12 = vcmask 162944  }
  0x94   :  { %v80_v47 = vpop.permute.xlu0 %79   ;;  %v86_v48 = vpop.permute.xlu1 %85  }
  0x95   :  { %82 = vst.msk [vmem:[#allocation0] sm:$0x1] %vm81_vm13, %v80_v47   ;;  %v146_v49 = vpop.permute.xlu2 %145   ;;  %vm177_vm13 = vcmask 130144  }
  0x96   :  { %88 = vst.msk [vmem:[#allocation0] sm:$0x1] %vm87_vm14, %v86_v48   ;;  %vm183_vm14 = vcmask 97344  }
  0x97   :  { %94 = vst.msk [vmem:[#allocation0] sm:$0x1] %vm93_vm15, %v92_v40   ;;  %vm189_vm15 = vcmask 64544  }
  0x9c   :  { %v98_v50 = vpop.permute.xlu0 %97   ;;  %v104_v51 = vpop.permute.xlu1 %103  }
  0x9d   :  { %100 = vst.msk [vmem:[#allocation0] sm:$0x1] %vm99_vm0, %v98_v50   ;;  %v164_v52 = vpop.permute.xlu2 %163  }
  0x9e   :  { %106 = vst.msk [vmem:[#allocation0] sm:$0x1] %vm105_vm1, %v104_v51  }
  0x9f   :  { %112 = vst.msk [vmem:[#allocation0] sm:$0x1] %vm111_vm2, %v110_v43  }
  0xa4   :  { %v116_v53 = vpop.permute.xlu0 %115   ;;  %v122_v54 = vpop.permute.xlu1 %121  }
  0xa5   :  { %118 = vst.msk [vmem:[#allocation0] sm:$0x1] %vm117_vm3, %v116_v53   ;;  %v182_v55 = vpop.permute.xlu2 %181  }
  0xa6   :  { %124 = vst.msk [vmem:[#allocation0] sm:$0x1] %vm123_vm4, %v122_v54  }
  0xa7   :  { %130 = vst.msk [vmem:[#allocation0] sm:$0x1] %vm129_vm5, %v128_v46  }
  0xac   :  { %v134_v56 = vpop.permute.xlu0 %133   ;;  %v140_v57 = vpop.permute.xlu1 %139  }
  0xad   :  { %136 = vst.msk [vmem:[#allocation0] sm:$0x1] %vm135_vm6, %v134_v56  }
  0xae   :  { %142 = vst.msk [vmem:[#allocation0] sm:$0x1] %vm141_vm7, %v140_v57  }
  0xaf   :  { %148 = vst.msk [vmem:[#allocation0] sm:$0x1] %vm147_vm8, %v146_v49  }
  0xb4   :  { %v152_v58 = vpop.permute.xlu0 %151   ;;  %v158_v59 = vpop.permute.xlu1 %157  }
  0xb5   :  { %154 = vst.msk [vmem:[#allocation0] sm:$0x1] %vm153_vm9, %v152_v58  }
  0xb6   :  { %160 = vst.msk [vmem:[#allocation0] sm:$0x1] %vm159_vm10, %v158_v59  }
  0xb7   :  { %166 = vst.msk [vmem:[#allocation0] sm:$0x1] %vm165_vm11, %v164_v52  }
  0xbc   :  { %v170_v60 = vpop.permute.xlu0 %169   ;;  %v176_v61 = vpop.permute.xlu1 %175  }
  0xbd   :  { %172 = vst.msk [vmem:[#allocation0] sm:$0x1] %vm171_vm12, %v170_v60  }
  0xbe   :  { %178 = vst.msk [vmem:[#allocation0] sm:$0x1] %vm177_vm13, %v176_v61  }
  0xbf   :  { %184 = vst.msk [vmem:[#allocation0] sm:$0x1] %vm183_vm14, %v182_v55  }
  0xc4   :  { %v188_v62 = vpop.permute.xlu0 %187  }
  0xc5   :  { %190 = vst.msk [vmem:[#allocation0] sm:$0x1] %vm189_vm15, %v188_v62  }
  0xcc   :  { %v193_v63 = vld [vmem:[#allocation0] sm:$0x1] }
  0xcd   :  { %196 = vst [vmem:[%s400_s1] sm:$0x1] %v193_v63 }

// kernel: resblock_forward.1
= control target key start
LH: loop header
LB: loop body
LE: loop exit
PB: predicated region body
PF: predicated region fallthrough
CT: control target
= control target key end

     0   :  { %s1017_s18 = smov 0   ;;  %s1360_s0 = inlined_call_operand.vmem [shape: f32[2,8,128], index: 0, kind: input, shape index: {}]   ;;  %s1361_s1 = inlined_call_operand.vmem [shape: bf16[128,384], index: 1, kind: input, shape index: {}]   ;;  %s1362_s2 = inlined_call_operand.vmem [shape: bf16[128,384], index: 2, kind: input, shape index: {}]   ;;  %s1363_s3 = inlined_call_operand.vmem [shape: f32[1,128], index: 3, kind: input, shape index: {}]   ;;  %s1364_s4 = inlined_call_operand.vmem [shape: f32[1,128], index: 4, kind: input, shape index: {}]   ;;  %s1365_s5 = inlined_call_operand.vmem [shape: f32[2,8,128], index: 5, kind: output, shape index: {}]  }
   0x1 LB: > { %s720_s19 = sadd.s32 4294967295, %s985_s18   ;;  %p724_p0 = scmp.ge.s32.totalorder %s985_s18, 1  ;;  %s985_s18 = sphi %s1017_s18, %s15_s18  }
   0x2   : > { %p186_p1 = scmp.lt.s32.totalorder %s985_s18, 3 }
   0x4   : > { %p187_p2 = pnand %p724_p0, %p186_p1 }
   0x5   : > { %p212_p3 = scmp.lt.s32.totalorder (!%p187_p2), %s720_s19, 1 }
   0x6   : > { %190 = sbr.rel (%p187_p2) target bundleno = 332 (0x14c), region = 40 }
   0xb   : > { %v813_v0 = vld [vmem:[%s1361_s1 + $0xa8] sm:$0xf]  ;;  %v943_v1 = vld [vmem:[%s1361_s1 + $0xb0] sm:$0xf0]  ;;  %v942_v2 = vld [vmem:[%s1361_s1 + $0xac] sm:$0xf] }
   0xc   : > { %v814_v3 = vor.u32 %v943_v1, %v813_v0  ;;  %v815_v4 = vld [vmem:[%s1361_s1 + $0xb4] sm:$0xf0]  ;;  %v821_v5 = vld [vmem:[%s1361_s1 + $0xb0] sm:$0xf]  ;;  %v944_v6 = vld [vmem:[%s1361_s1 + $0xb8] sm:$0xf0] }
   0xd   : > { %v818_v7 = vor.u32 %v942_v2, %v815_v4  ;;  %v822_v8 = vor.u32 %v944_v6, %v821_v5  ;;  %v801_v9 = vld [vmem:[%s1361_s1 + $0x90] sm:$0xf]  ;;  %v940_v10 = vld [vmem:[%s1361_s1 + $0x98] sm:$0xf0]  ;;  %v939_v11 = vld [vmem:[%s1361_s1 + $0x94] sm:$0xf] }
   0xe   : > { %398 = vmatpush.bf16.msra.mxu0 %v814_v3  ;;  %v802_v12 = vor.u32 %v940_v10, %v801_v9  ;;  %v803_v13 = vld [vmem:[%s1361_s1 + $0x9c] sm:$0xf0]  ;;  %v809_v14 = vld [vmem:[%s1361_s1 + $0x98] sm:$0xf]  ;;  %v941_v15 = vld [vmem:[%s1361_s1 + $0xa0] sm:$0xf0] }
   0xf   : > { %411 = vmatpush.bf16.msra.mxu1 %v818_v7  ;;  %424 = vmatpush.bf16.msra.mxu2 %v822_v8  ;;  %v806_v16 = vor.u32 %v939_v11, %v803_v13  ;;  %v810_v17 = vor.u32 %v941_v15, %v809_v14  ;;  %v789_v18 = vld [vmem:[%s1361_s1 + $0x78] sm:$0xf]  ;;  %v937_v19 = vld [vmem:[%s1361_s1 + $0x80] sm:$0xf0]  ;;  %v936_v20 = vld [vmem:[%s1361_s1 + $0x7c] sm:$0xf] }
  0x10   : > { %v791_v21 = vld [vmem:[%s1361_s1 + $0x84] sm:$0xf0]  ;;  %v797_v22 = vld [vmem:[%s1361_s1 + $0x80] sm:$0xf]  ;;  %v938_v23 = vld [vmem:[%s1361_s1 + $0x88] sm:$0xf0]  ;;  %v790_v24 = vor.u32 %v937_v19, %v789_v18 }
  0x11   : > { %v794_v25 = vor.u32 %v936_v20, %v791_v21  ;;  %v798_v26 = vor.u32 %v938_v23, %v797_v22  ;;  %v777_v27 = vld [vmem:[%s1361_s1 + $0x60] sm:$0xf]  ;;  %v934_v28 = vld [vmem:[%s1361_s1 + $0x68] sm:$0xf0]  ;;  %v933_v29 = vld [vmem:[%s1361_s1 + $0x64] sm:$0xf] }
  0x12   : > { %399 = vmatpush.bf16.msra.mxu0 %v802_v12  ;;  %v779_v30 = vld [vmem:[%s1361_s1 + $0x6c] sm:$0xf0]  ;;  %v785_v31 = vld [vmem:[%s1361_s1 + $0x68] sm:$0xf]  ;;  %v935_v32 = vld [vmem:[%s1361_s1 + $0x70] sm:$0xf0]  ;;  %v778_v33 = vor.u32 %v934_v28, %v777_v27 }
  0x13   : > { %412 = vmatpush.bf16.msra.mxu1 %v806_v16  ;;  %425 = vmatpush.bf16.msra.mxu2 %v810_v17  ;;  %v782_v34 = vor.u32 %v933_v29, %v779_v30  ;;  %v786_v35 = vor.u32 %v935_v32, %v785_v31  ;;  %v765_v36 = vld [vmem:[%s1361_s1 + $0x48] sm:$0xf]  ;;  %v931_v37 = vld [vmem:[%s1361_s1 + $0x50] sm:$0xf0]  ;;  %v930_v38 = vld [vmem:[%s1361_s1 + $0x4c] sm:$0xf] }
  0x14   : > { %v767_v39 = vld [vmem:[%s1361_s1 + $0x54] sm:$0xf0]  ;;  %v773_v40 = vld [vmem:[%s1361_s1 + $0x50] sm:$0xf]  ;;  %v932_v41 = vld [vmem:[%s1361_s1 + $0x58] sm:$0xf0]  ;;  %v766_v42 = vor.u32 %v931_v37, %v765_v36 }
  0x15   : > { %v753_v43 = vld [vmem:[%s1361_s1 + $0x30] sm:$0xf]  ;;  %v928_v44 = vld [vmem:[%s1361_s1 + $0x38] sm:$0xf0]  ;;  %v927_v45 = vld [vmem:[%s1361_s1 + $0x34] sm:$0xf]  ;;  %v770_v46 = vor.u32 %v930_v38, %v767_v39  ;;  %v774_v47 = vor.u32 %v932_v41, %v773_v40 }
  0x16   : > { %400 = vmatpush.bf16.msra.mxu0 %v790_v24  ;;  %v909_v48 = vld [vmem:[%s1362_s2 + $0xa8] sm:$0xf]  ;;  %v967_v49 = vld [vmem:[%s1362_s2 + $0xb0] sm:$0xf0]  ;;  %v755_v50 = vld [vmem:[%s1361_s1 + $0x3c] sm:$0xf0]  ;;  %v754_v56 = vor.u32 %v928_v44, %v753_v43 }
  0x17   : > { %413 = vmatpush.bf16.msra.mxu1 %v794_v25  ;;  %426 = vmatpush.bf16.msra.mxu2 %v798_v26  ;;  %v761_v51 = vld [vmem:[%s1361_s1 + $0x38] sm:$0xf]  ;;  %v929_v52 = vld [vmem:[%s1361_s1 + $0x40] sm:$0xf0]  ;;  %v910_v53 = vor.u32 %v967_v49, %v909_v48  ;;  %s1371_s19 = smov (!%p212_p3, %s720_s19), 1  ;;  %v758_v60 = vor.u32 %v927_v45, %v755_v50 }
  0x18   : > { %v741_v54 = vld [vmem:[%s1361_s1 + $0x18] sm:$0xf]  ;;  %v897_v55 = vld [vmem:[%s1362_s2 + $0x90] sm:$0xf]  ;;  %v925_v57 = vld [vmem:[%s1361_s1 + $0x20] sm:$0xf0]  ;;  %v762_v61 = vor.u32 %v929_v52, %v761_v51 }
  0x19   : > { %v924_v58 = vld [vmem:[%s1361_s1 + $0x1c] sm:$0xf]  ;;  %614 = vmatpush.bf16.msra.mxu3 %v910_v53  ;;  %v743_v62 = vld [vmem:[%s1361_s1 + $0x24] sm:$0xf0]  ;;  %v749_v63 = vld [vmem:[%s1361_s1 + $0x20] sm:$0xf]  ;;  %v742_v6 = vor.u32 %v925_v57, %v741_v54 }
  0x1a   : > { %401 = vmatpush.bf16.msra.mxu0 %v778_v33  ;;  %v964_v59 = vld [vmem:[%s1362_s2 + $0x98] sm:$0xf0]  ;;  %v926_v0 = vld [vmem:[%s1361_s1 + $0x28] sm:$0xf0]  ;;  %s725_s20 = sshll.u32 %s1371_s19, 3  ;;  %v746_v11 = vor.u32 %v924_v58, %v743_v62 }
  0x1b   : > { %414 = vmatpush.bf16.msra.mxu1 %v782_v34  ;;  %427 = vmatpush.bf16.msra.mxu2 %v786_v35  ;;  %v898_v1 = vor.u32 %v964_v59, %v897_v55  ;;  %v885_v2 = vld [vmem:[%s1362_s2 + $0x78] sm:$0xf]  ;;  %v961_v3 = vld [vmem:[%s1362_s2 + $0x80] sm:$0xf0]  ;;  %v729_v4 = vld [vmem:[%s1361_s1] sm:$0xf]  ;;  %v750_v12 = vor.u32 %v926_v0, %v749_v63  ;;  %s215_s14 = scalar_lea.vmem %s1360_s0, %s725_s20  ;;  %s219_s17 = scalar_lea.vmem %s1365_s5, %s725_s20 }
  0x1c   : > { %v922_v5 = vld [vmem:[%s1361_s1 + $0x8] sm:$0xf0]  ;;  %v921_v7 = vld [vmem:[%s1361_s1 + $0x4] sm:$0xf]  ;;  %v731_v8 = vld [vmem:[%s1361_s1 + $0xc] sm:$0xf0]  ;;  %v886_v10 = vor.u32 %v961_v3, %v885_v2 }
  0x1d   : > { %v737_v9 = vld [vmem:[%s1361_s1 + $0x8] sm:$0xf]  ;;  %615 = vmatpush.bf16.msra.mxu3 %v898_v1  ;;  %v923_v13 = vld [vmem:[%s1361_s1 + $0x10] sm:$0xf0]  ;;  %v873_v14 = vld [vmem:[%s1362_s2 + $0x60] sm:$0xf]  ;;  %v730_v20 = vor.u32 %v922_v5, %v729_v4  ;;  %v734_v23 = vor.u32 %v921_v7, %v731_v8 }
  0x1e   : > { %402 = vmatpush.bf16.msra.mxu0 %v766_v42  ;;  %v958_v15 = vld [vmem:[%s1362_s2 + $0x68] sm:$0xf0]  ;;  %v911_v17 = vld [vmem:[%s1362_s2 + $0xb4] sm:$0xf0]  ;;  %v917_v18 = vld [vmem:[%s1362_s2 + $0xb0] sm:$0xf]  ;;  %v738_v24 = vor.u32 %v923_v13, %v737_v9 }
  0x1f   : > { %415 = vmatpush.bf16.msra.mxu1 %v770_v46  ;;  %428 = vmatpush.bf16.msra.mxu2 %v774_v47  ;;  %v966_v16 = vld [vmem:[%s1362_s2 + $0xac] sm:$0xf]  ;;  %v968_v19 = vld [vmem:[%s1362_s2 + $0xb8] sm:$0xf0]  ;;  %v1217_v21 = vld [vmem:[%s215_s14] sm:$0xff]  ;;  %v874_v22 = vor.u32 %v958_v15, %v873_v14 }
  0x20   : > { %v914_v25 = vor.u32 %v966_v16, %v911_v17  ;;  %v918_v26 = vor.u32 %v968_v19, %v917_v18  ;;  %v963_v27 = vld [vmem:[%s1362_s2 + $0x94] sm:$0xf]  ;;  %v237_v28 = vpack.c.bf16 %v1217_v21, %v1217_v21  ;;  %v899_v29 = vld [vmem:[%s1362_s2 + $0x9c] sm:$0xf0]  ;;  %v905_v30 = vld [vmem:[%s1362_s2 + $0x98] sm:$0xf]  ;;  %v221_v18 = vlaneseq }
  0x21   : > { %616 = vmatpush.bf16.msra.mxu3 %v886_v10  ;;  %v965_v31 = vld [vmem:[%s1362_s2 + $0xa0] sm:$0xf0]  ;;  %v902_v32 = vor.u32 %v963_v27, %v899_v29  ;;  %v960_v34 = vld [vmem:[%s1362_s2 + $0x7c] sm:$0xf]  ;;  %v887_v35 = vld [vmem:[%s1362_s2 + $0x84] sm:$0xf0] }
  0x22   : > { %403 = vmatpush.bf16.msra.mxu0 %v754_v56  ;;  %v906_v33 = vor.u32 %v965_v31, %v905_v30  ;;  %v893_v36 = vld [vmem:[%s1362_s2 + $0x80] sm:$0xf]  ;;  %v962_v37 = vld [vmem:[%s1362_s2 + $0x88] sm:$0xf0]  ;;  %v890_v38 = vor.u32 %v960_v34, %v887_v35  ;;  %v957_v40 = vld [vmem:[%s1362_s2 + $0x64] sm:$0xf] }
  0x23   : > { %416 = vmatpush.bf16.msra.mxu1 %v758_v60  ;;  %429 = vmatpush.bf16.msra.mxu2 %v762_v61  ;;  %v894_v39 = vor.u32 %v962_v37, %v893_v36  ;;  %v875_v41 = vld [vmem:[%s1362_s2 + $0x6c] sm:$0xf0]  ;;  %v881_v42 = vld [vmem:[%s1362_s2 + $0x68] sm:$0xf]  ;;  %v959_v43 = vld [vmem:[%s1362_s2 + $0x70] sm:$0xf0] }
  0x24   : > { %v878_v44 = vor.u32 %v957_v40, %v875_v41  ;;  %v882_v45 = vor.u32 %v959_v43, %v881_v42  ;;  %v861_v46 = vld [vmem:[%s1362_s2 + $0x48] sm:$0xf]  ;;  %v955_v47 = vld [vmem:[%s1362_s2 + $0x50] sm:$0xf0]  ;;  %v954_v48 = vld [vmem:[%s1362_s2 + $0x4c] sm:$0xf] }
  0x25   : > { %617 = vmatpush.bf16.msra.mxu3 %v874_v22  ;;  %v862_v49 = vor.u32 %v955_v47, %v861_v46  ;;  %v863_v50 = vld [vmem:[%s1362_s2 + $0x54] sm:$0xf0]  ;;  %v869_v51 = vld [vmem:[%s1362_s2 + $0x50] sm:$0xf]  ;;  %v956_v52 = vld [vmem:[%s1362_s2 + $0x58] sm:$0xf0] }
  0x26   : > { %404 = vmatpush.bf16.msra.mxu0 %v742_v6  ;;  %v866_v53 = vor.u32 %v954_v48, %v863_v50  ;;  %v870_v54 = vor.u32 %v956_v52, %v869_v51  ;;  %v849_v55 = vld [vmem:[%s1362_s2 + $0x30] sm:$0xf]  ;;  %v952_v56 = vld [vmem:[%s1362_s2 + $0x38] sm:$0xf0]  ;;  %v951_v58 = vld [vmem:[%s1362_s2 + $0x34] sm:$0xf] }
  0x27   : > { %417 = vmatpush.bf16.msra.mxu1 %v746_v11  ;;  %430 = vmatpush.bf16.msra.mxu2 %v750_v12  ;;  %v850_v57 = vor.u32 %v952_v56, %v849_v55  ;;  %v851_v59 = vld [vmem:[%s1362_s2 + $0x3c] sm:$0xf0]  ;;  %v857_v60 = vld [vmem:[%s1362_s2 + $0x38] sm:$0xf]  ;;  %v953_v62 = vld [vmem:[%s1362_s2 + $0x40] sm:$0xf0] }
  0x28   : > { %v854_v61 = vor.u32 %v951_v58, %v851_v59  ;;  %v858_v63 = vor.u32 %v953_v62, %v857_v60  ;;  %v837_v0 = vld [vmem:[%s1362_s2 + $0x18] sm:$0xf]  ;;  %v949_v1 = vld [vmem:[%s1362_s2 + $0x20] sm:$0xf0]  ;;  %v948_v2 = vld [vmem:[%s1362_s2 + $0x1c] sm:$0xf] }
  0x29   : > { %618 = vmatpush.bf16.msra.mxu3 %v862_v49  ;;  %v838_v3 = vor.u32 %v949_v1, %v837_v0  ;;  %v839_v4 = vld [vmem:[%s1362_s2 + $0x24] sm:$0xf0]  ;;  %v845_v5 = vld [vmem:[%s1362_s2 + $0x20] sm:$0xf]  ;;  %v950_v6 = vld [vmem:[%s1362_s2 + $0x28] sm:$0xf0] }
  0x2a   : > { %405 = vmatpush.bf16.msra.mxu0 %v730_v20  ;;  %v842_v7 = vor.u32 %v948_v2, %v839_v4  ;;  %v846_v8 = vor.u32 %v950_v6, %v845_v5  ;;  %v825_v9 = vld [vmem:[%s1362_s2] sm:$0xf]  ;;  %v946_v10 = vld [vmem:[%s1362_s2 + $0x8] sm:$0xf0]  ;;  %v945_v11 = vld [vmem:[%s1362_s2 + $0x4] sm:$0xf] }
  0x2b   : > { %418 = vmatpush.bf16.msra.mxu1 %v734_v23  ;;  %431 = vmatpush.bf16.msra.mxu2 %v738_v24  ;;  %v826_v12 = vor.u32 %v946_v10, %v825_v9  ;;  %v827_v13 = vld [vmem:[%s1362_s2 + $0xc] sm:$0xf0]  ;;  %v833_v14 = vld [vmem:[%s1362_s2 + $0x8] sm:$0xf]  ;;  %v947_v15 = vld [vmem:[%s1362_s2 + $0x10] sm:$0xf0] }
  0x2c   : > { %v830_v16 = vor.u32 %v945_v11, %v827_v13  ;;  %v834_v17 = vor.u32 %v947_v15, %v833_v14  ;;  %v222_v19 = vshrl.u32 %v221_v18, 7  ;;  %v977_v22 = vld [vmem:[%s1363_s3] ss:$0 sm:$0xff] }
  0x2d   : > { %406 = vmatmul.bf16.vlgmr.msra.gmra.mxu0 %v237_v28  ;;  %619 = vmatpush.bf16.msra.mxu3 %v850_v57  ;;  %v978_v42 = vld [vmem:[%s1364_s4] ss:$0 sm:$0xff] }
  0x2e   : > { %627 = vmatpush.bf16.msrb.mxu0 %v914_v25  ;;  %419 = vmatmul.bf16.vlgmr.msra.gmra.mxu1 %v237_v28  ;;  %v227_v20 = vand.u32 7, %v222_v19 }
  0x2f   : > { %640 = vmatpush.bf16.msrb.mxu1 %v918_v26  ;;  %432 = vmatmul.bf16.vlgmr.msra.gmra.mxu2 %v237_v28 }
  0x30   : > { %vm1332_vm0 = vcmp.eq.s32.totalorder %v227_v20, 0  ;;  %vm1338_vm1 = vcmp.eq.s32.totalorder %v227_v20, 7 }
  0x31   : > { %620 = vmatpush.bf16.msra.mxu3 %v838_v3 }
  0x32   : > { %628 = vmatpush.bf16.msrb.mxu0 %v902_v32 }
  0x33   : > { %641 = vmatpush.bf16.msrb.mxu1 %v906_v33 }
  0x35   : > { %621 = vmatpush.bf16.msra.mxu3 %v826_v12 }
  0x36   : > { %629 = vmatpush.bf16.msrb.mxu0 %v890_v38 }
  0x37   : > { %642 = vmatpush.bf16.msrb.mxu1 %v894_v39 }
  0x3a   : > { %630 = vmatpush.bf16.msrb.mxu0 %v878_v44 }
  0x3b   : > { %643 = vmatpush.bf16.msrb.mxu1 %v882_v45 }
  0x3e   : > { %631 = vmatpush.bf16.msrb.mxu0 %v866_v53 }
  0x3f   : > { %644 = vmatpush.bf16.msrb.mxu1 %v870_v54 }
  0x42   : > { %632 = vmatpush.bf16.msrb.mxu0 %v854_v61 }
  0x43   : > { %645 = vmatpush.bf16.msrb.mxu1 %v858_v63 }
  0x46   : > { %633 = vmatpush.bf16.msrb.mxu0 %v842_v7 }
  0x47   : > { %646 = vmatpush.bf16.msrb.mxu1 %v846_v8 }
  0x4a   : > { %634 = vmatpush.bf16.msrb.mxu0 %v830_v16 }
  0x4b   : > { %647 = vmatpush.bf16.msrb.mxu1 %v834_v17 }
  0xaa   : > { %v407_v23 = vpop.f32.mrf.mxu0 }
  0xab   : > { %v437_v25 = vrot.slane %v407_v23, 7  ;;  %v420_v26 = vpop.f32.mrf.mxu1 }
  0xac   : > { %v449_v27 = vadd.f32 %v977_v22, %v420_v26 }
  0xad   : > { %v440_v28 = vsel %vm1332_vm0, 0.0, %v437_v25 }
  0xae   : > { %v450_v29 = vadd.f32 %v449_v27, %v440_v28 }
  0xb2   : > { %v433_v31 = vpop.f32.mrf.mxu2  ;;  %v409_v33 = vpop.f32.mrf.mxu0 }
  0xb3   : > { %v441_v32 = vrot.slane %v433_v31, 1  ;;  %v422_v34 = vpop.f32.mrf.mxu1 }
  0xb5   : > { %v444_v35 = vsel %vm1338_vm1, 0.0, %v441_v32 }
  0xb6   : > { %v451_v36 = vadd.f32 %v450_v29, %v444_v35 }
  0xb8   : > { %v452_v37 = vmax.f32 %v451_v36, 0.0 }
  0xba   : > { %v435_v38 = vpop.f32.mrf.mxu2  ;;  %v453_v39 = vpack.c.bf16 %v452_v37, %v452_v37 }
  0xbc   : > { %622 = vmatmul.bf16.vlgmr.msra.gmra.mxu3 %v453_v39  ;;  %635 = vmatmul.bf16.vlgmr.msrb.gmra.mxu0 %v453_v39 }
  0xbd   : > { %648 = vmatmul.bf16.vlgmr.msrb.gmra.mxu1 %v453_v39 }
 0x139   : > { %v636_v40 = vpop.f32.mrf.mxu0 }
 0x13a   : > { %v649_v41 = vpop.f32.mrf.mxu1  ;;  %v661_v46 = vadd.f32 %v978_v42, %v636_v40 }
 0x13b   : > { %v655_v44 = vrot.slane %v649_v41, 1 }
 0x13d   : > { %v656_v51 = vsel %vm1338_vm1, 0.0, %v655_v44 }
 0x13f   : > { %v623_v43 = vpop.f32.mrf.mxu3 }
 0x140   : > { %v653_v45 = vrot.slane %v623_v43, 7 }
 0x141   : > { %v638_v47 = vpop.f32.mrf.mxu0 }
 0x142   : > { %v654_v48 = vsel %vm1332_vm0, 0.0, %v653_v45  ;;  %v651_v49 = vpop.f32.mrf.mxu1 }
 0x143   : > { %v662_v50 = vadd.f32 %v661_v46, %v654_v48 }
 0x145   : > { %v663_v52 = vadd.f32 %v662_v50, %v656_v51 }
 0x147   : > { %v664_v53 = vadd.f32 %v663_v52, %v1217_v21  ;;  %v625_v54 = vpop.f32.mrf.mxu3 }
 0x149   : > { %v665_v55 = vmax.f32 %v664_v53, 0.0 }
 0x14b   : > { %666 = vst [vmem:[%s219_s17] sm:$0xff] %v665_v55 }
 0x14c PF: > { %s15_s18 = sadd.s32 1, %s985_s18  }
 0x14d   : > { %p12_p4 = scmp.ge.s32.totalorder %s15_s18, 4  }
 0x14f   :  { %14 = sbr.rel (!%p12_p4) target bundleno = 1 (0x1), region = 70 }

</bundles_post_ra>
